<compile_context>
chip_gen: v7x
topology: tpu7x:2x2x1
jax: 0.10.0
libtpu: 0.0.40
codegen_flags: <defaults>
</compile_context>

<pallas_src>
import jax
import jax.numpy as jnp
from jax.experimental import pallas as pl
from jax.experimental.pallas import tpu as pltpu


# ----------------------------- kernel -------------------------------------


def _make_eigen_mlp_kernel(num_layers, embed_dim, out_dim, use_bf16):
    """Fused kernel (transposed orientation): all layers + out_proj in one body.

    Ref layout:
      x_ref  : (1, TM)            input eigenvalues (lane-dense)          f32
      sp_ref : (P, L+2)           col0 = layer-0 weight, cols 1..L = folded
                                  biases b_0..b_{L-1}, col L+1 = out bias  f32
      wh_ref : ((L-1)*E, E)       stacked folded hidden weights (out,in)  bf16/f32
      wo_ref : (O, E)             out_proj weight (out,in)                bf16/f32
      out_ref: (O, TM)            output slab (lane-dense)                f32
    """
    num_hidden = num_layers - 1
    cdt = jnp.bfloat16 if use_bf16 else jnp.float32

    def compute(x_ref, sp_ref, wh_ref, wo_ref, out_ref):
        x = x_ref[...]                                   # (1, TM)  f32
        sp = sp_ref[...]                                 # (P, L+2) f32
        w0 = sp[:embed_dim, 0:1]                         # (E, 1)
        b0 = sp[:embed_dim, 1:2]                         # (E, 1)
        # Layer 0: Linear(1, E) + folded BN is a broadcast scale+shift on the
        # VPU (avoids a degenerate K=1 MXU matmul); ReLU fused.
        h = jnp.maximum(w0 * x + b0, 0.0)                # (E, TM) f32

        if num_hidden:
            wh = wh_ref[...]                             # ((L-1)*E, E) cdt
            for l in range(num_hidden):
                w = wh[l * embed_dim:(l + 1) * embed_dim, :]       # (E, E)
                b = sp[:embed_dim, 2 + l:3 + l]                    # (E, 1)
                acc = jnp.dot(w, h.astype(cdt),
                              preferred_element_type=jnp.float32)  # (E, TM) f32
                h = jnp.maximum(acc + b, 0.0)            # ReLU; dropout = identity (eval)

        bo = sp[:out_dim, num_layers + 1:num_layers + 2]            # (O, 1)
        y = jnp.dot(wo_ref[...], h.astype(cdt),
                    preferred_element_type=jnp.float32) + bo        # (O, TM)
        out_ref[...] = y.astype(out_ref.dtype)

    if num_hidden:
        def kernel(x_ref, sp_ref, wh_ref, wo_ref, out_ref):
            compute(x_ref, sp_ref, wh_ref, wo_ref, out_ref)
    else:
        def kernel(x_ref, sp_ref, wo_ref, out_ref):
            compute(x_ref, sp_ref, None, wo_ref, out_ref)
    return kernel


# --------------------------- wrapper / glue --------------------------------


def _fold_bn(lp, eps):
    """Fold BatchNorm1d running stats (eval mode) into the Linear weight/bias."""
    scale = lp["gamma"] / jnp.sqrt(lp["var"] + eps)
    shift = lp["beta"] - lp["mean"] * scale
    w_f = lp["w"] * scale[None, :]                       # (in, out)
    b_f = lp["b"] * scale + shift                        # (out,)
    return w_f, b_f


def prepare_eigen_mlp_params(layer_params, out_w, out_b, *, eps=1e-5, use_bf16=True):
    """One-time param prep: BN folding, packing, transposes, dtype casts."""
    embed_dim = int(layer_params[0]["w"].shape[1])
    out_dim = int(out_w.shape[1])
    num_layers = len(layer_params)
    wdt = jnp.bfloat16 if use_bf16 else jnp.float32

    folded = [_fold_bn(lp, eps) for lp in layer_params]

    # Pack layer-0 weight + every folded bias + out bias into one small f32 ref.
    P = max(embed_dim, out_dim)

    def col(v):
        v = jnp.asarray(v, jnp.float32).reshape(-1)
        return jnp.pad(v, (0, P - v.shape[0]))

    cols = [col(folded[0][0].reshape(embed_dim))]        # layer-0 weight (E,)
    cols += [col(b) for (_, b) in folded]                # folded biases b_0..b_{L-1}
    cols.append(col(out_b))                              # out_proj bias (O,) zero-padded
    small = jnp.stack(cols, axis=1)                      # (P, L+2) f32

    w_hidden = None
    if num_layers > 1:
        # Each hidden weight stored (out, in) = W'.T, stacked along sublanes.
        w_hidden = jnp.concatenate([w.T for (w, _) in folded[1:]], axis=0).astype(wdt)
    wo_t = jnp.asarray(out_w).T.astype(wdt)              # (O, E)

    return dict(small=small, w_hidden=w_hidden, wo_t=wo_t,
                embed_dim=embed_dim, out_dim=out_dim,
                num_layers=num_layers, use_bf16=use_bf16)


def _choose_tiling(M, block_m_hint):
    """Lane-dense M tiling: 128-aligned, large tiles; even grid >= 4 if multi-tile."""
    m_pad0 = max(pl.cdiv(M, 128) * 128, 128)
    cap = max(128, (int(block_m_hint) // 128) * 128)
    if m_pad0 <= cap:
        return m_pad0, m_pad0, 1
    ntiles = pl.cdiv(m_pad0, cap)
    ntiles = max(ntiles, 4)            # >= 2 steps per v7x TensorCore
    if ntiles % 2:
        ntiles += 1                    # balanced split across 2 TCs
    block_m = pl.cdiv(pl.cdiv(m_pad0, ntiles), 128) * 128
    ntiles = pl.cdiv(m_pad0, block_m)
    if ntiles % 2:
        ntiles += 1
    return block_m, ntiles * block_m, ntiles


def eigen_mlp_forward_prepared(x, prep, *, block_m=2048):
    """x: (B, S, 1) float32; prep: output of prepare_eigen_mlp_params."""
    B, S, in_dim = x.shape
    assert in_dim == 1
    M = B * S
    E = prep["embed_dim"]
    O = prep["out_dim"]
    L = prep["num_layers"]

    block_m, m_pad, ntiles = _choose_tiling(M, block_m)

    # Lane-dense, zero-padded input slab.
    x_t = jnp.pad(x.reshape(1, M).astype(jnp.float32), ((0, 0), (0, m_pad - M)))

    args = [x_t, prep["small"]]
    in_specs = [
        pl.BlockSpec((1, block_m), lambda i: (0, i)),
        pl.BlockSpec(prep["small"].shape, lambda i: (0, 0)),
    ]
    if prep["w_hidden"] is not None:
        args.append(prep["w_hidden"])
        in_specs.append(pl.BlockSpec(prep["w_hidden"].shape, lambda i: (0, 0)))
    args.append(prep["wo_t"])
    in_specs.append(pl.BlockSpec(prep["wo_t"].shape, lambda i: (0, 0)))

    kernel = _make_eigen_mlp_kernel(L, E, O, prep["use_bf16"])

    flops = m_pad * (2 * E + 2 * (L - 1) * E * E + 2 * E * O)
    param_bytes = sum(int(a.size) * int(a.dtype.itemsize) for a in args[1:])
    bytes_accessed = 4 * m_pad * (1 + O) + param_bytes

    out_t = pl.pallas_call(
        kernel,
        out_shape=jax.ShapeDtypeStruct((O, m_pad), jnp.float32),
        grid=(ntiles,),
        in_specs=in_specs,
        out_specs=pl.BlockSpec((O, block_m), lambda i: (0, i)),
        compiler_params=pltpu.CompilerParams(
            dimension_semantics=("parallel",)),
        cost_estimate=pl.CostEstimate(flops=flops, transcendentals=0,
                                      bytes_accessed=bytes_accessed),
    )(*args)

    # TODO(synk): downstream consumers that accept an (out_dim, M) layout should
    # take out_t[:, :M] directly and skip this extra HBM round-trip (transpose).
    return out_t[:, :M].T.reshape(B, S, O)


def eigen_mlp_forward(x, layer_params, out_w, out_b, *, block_m=2048, eps=1e-5,
                      use_bf16=True):
    prep = prepare_eigen_mlp_params(layer_params, out_w, out_b, eps=eps, use_bf16=use_bf16)
    return eigen_mlp_forward_prepared(x, prep, block_m=block_m)


# ----------------------------- references ----------------------------------


def eigen_mlp_reference(x, layer_params, out_w, out_b, *, eps=1e-5, simulate_bf16=False):
    """Pure-JAX reference. simulate_bf16=False mirrors the PyTorch eval forward
    in full f32 (HIGHEST-precision dots); simulate_bf16=True mirrors the
    kernel's bf16-operand MXU path (BN folded, bf16 matmul operands, f32
    accumulation) for a tight numerical check of the kernel."""
    B, S, _ = x.shape
    h = x.reshape(B * S, 1).astype(jnp.float32)
    hp = jax.lax.Precision.HIGHEST

    if not simulate_bf16:
        for lp in layer_params:
            h = jnp.dot(h, lp["w"], precision=hp) + lp["b"]
            h = (h - lp["mean"]) / jnp.sqrt(lp["var"] + eps) * lp["gamma"] + lp["beta"]
            h = jnp.maximum(h, 0.0)
        y = jnp.dot(h, out_w, precision=hp) + out_b
        return y.reshape(B, S, -1)

    for i, lp in enumerate(layer_params):
        w_f, b_f = _fold_bn(lp, eps)
        if i == 0:
            h = h * w_f.reshape(1, -1) + b_f
        else:
            h = jnp.dot(h.astype(jnp.bfloat16), w_f.astype(jnp.bfloat16),
                        preferred_element_type=jnp.float32) + b_f
        h = jnp.maximum(h, 0.0)
    y = jnp.dot(h.astype(jnp.bfloat16), jnp.asarray(out_w).astype(jnp.bfloat16),
                preferred_element_type=jnp.float32) + out_b
    return y.reshape(B, S, -1)


# ------------------------------- test ---------------------------------------


def _make_params(key, num_layers, embed_dim, out_dim):
    keys = jax.random.split(key, 4 * num_layers + 3)
    layer_params = []
    k = 0
    for i in range(num_layers):
        in_d = 1 if i == 0 else embed_dim
        # PyTorch stores Linear weight as (out, in); transpose to (in, out) for x @ W.
        w_pt = jax.random.normal(keys[k], (embed_dim, in_d), jnp.float32) * 0.2; k += 1
        b = jax.random.normal(keys[k], (embed_dim,), jnp.float32) * 0.05; k += 1
        gamma = 1.0 + 0.1 * jax.random.normal(keys[k], (embed_dim,), jnp.float32); k += 1
        beta = 0.05 * jax.random.normal(keys[k], (embed_dim,), jnp.float32); k += 1
        mean = 0.1 * jnp.arange(embed_dim, dtype=jnp.float32) / embed_dim
        var = 1.0 + 0.05 * jnp.arange(embed_dim, dtype=jnp.float32) / embed_dim
        layer_params.append(dict(w=w_pt.T, b=b, gamma=gamma, beta=beta, mean=mean, var=var))
    out_w_pt = jax.random.normal(keys[k], (out_dim, embed_dim), jnp.float32) * 0.2; k += 1
    out_b = jax.random.normal(keys[k], (out_dim,), jnp.float32) * 0.05; k += 1
    return layer_params, out_w_pt.T, out_b, keys[k]


if __name__ == "__main__":
    num_layers = 3
    embed_dim = 32
    out_dim = 16
    # dropout prob is irrelevant in eval mode (identity).

    layer_params, out_w, out_b, xkey = _make_params(
        jax.random.PRNGKey(0), num_layers, embed_dim, out_dim)

    prep_bf16 = prepare_eigen_mlp_params(layer_params, out_w, out_b, use_bf16=True)
    prep_f32 = prepare_eigen_mlp_params(layer_params, out_w, out_b, use_bf16=False)

    # --- Shape 1: small, single-tile grid ---
    B, S = 2, 8
    x = jax.random.normal(xkey, (B, S, 1), jnp.float32)
    y_ref = eigen_mlp_reference(x, layer_params, out_w, out_b)
    y_ref_bf16 = eigen_mlp_reference(x, layer_params, out_w, out_b, simulate_bf16=True)

    y = jax.block_until_ready(eigen_mlp_forward_prepared(x, prep_bf16, block_m=2048))
    assert y.shape == (B, S, out_dim)
    # Tight check: same bf16-operand / f32-accumulate math as the kernel.
    assert jnp.allclose(y, y_ref_bf16, atol=1e-4, rtol=1e-4), "bf16 kernel vs bf16 reference"
    # Semantic check vs the full-f32 PyTorch-style forward (bf16-level tolerance).
    assert jnp.allclose(y, y_ref, atol=2e-2, rtol=2e-2), "bf16 kernel vs f32 reference"

    # f32-operand path (kept for v5e / strict-precision users).
    y32 = jax.block_until_ready(eigen_mlp_forward_prepared(x, prep_f32, block_m=2048))
    assert jnp.allclose(y32, y_ref, atol=2e-2, rtol=2e-2), "f32 kernel vs f32 reference"

    # --- Shape 2: non-multiple M, multi-tile even grid (M=900 -> 4 tiles of 256) ---
    B2, S2 = 3, 300
    x2 = jax.random.normal(jax.random.PRNGKey(1), (B2, S2, 1), jnp.float32)
    y2_ref = eigen_mlp_reference(x2, layer_params, out_w, out_b)
    y2_ref_bf16 = eigen_mlp_reference(x2, layer_params, out_w, out_b, simulate_bf16=True)

    y2 = jax.block_until_ready(eigen_mlp_forward_prepared(x2, prep_bf16, block_m=256))
    assert y2.shape == (B2, S2, out_dim)
    assert jnp.allclose(y2, y2_ref_bf16, atol=1e-4, rtol=1e-4), "bf16 kernel vs bf16 ref (padded)"
    assert jnp.allclose(y2, y2_ref, atol=2e-2, rtol=2e-2), "bf16 kernel vs f32 ref (padded)"

    print("KERNEL_OK")
</pallas_src>

<mosaic_0001>
module attributes {stable_mosaic.version = 11 : i64} {
  func.func @kernel(%arg0: i32, %arg1: memref<1x128xf32, #tpu.memory_space<vmem>>, %arg2: memref<32x5xf32, #tpu.memory_space<vmem>>, %arg3: memref<64x32xbf16, #tpu.memory_space<vmem>>, %arg4: memref<16x32xbf16, #tpu.memory_space<vmem>>, %arg5: memref<16x128xf32, #tpu.memory_space<vmem>>) attributes {dimension_semantics = [#tpu.dimension_semantics<parallel>], iteration_bounds = array<i64: 1>, scalar_prefetch = 0 : i64, scratch_operands = 0 : i64, tpu.core_type = #tpu.core_type<tc>, window_params = [{transform_indices = @transform_0, window_bounds = array<i64: 1, 128>}, {pipeline_mode = #tpu.pipeline_mode<synchronous>, transform_indices = @transform_1, window_bounds = array<i64: 32, 5>}, {pipeline_mode = #tpu.pipeline_mode<synchronous>, transform_indices = @transform_2, window_bounds = array<i64: 64, 32>}, {pipeline_mode = #tpu.pipeline_mode<synchronous>, transform_indices = @transform_3, window_bounds = array<i64: 16, 32>}, {transform_indices = @transform_4, window_bounds = array<i64: 16, 128>}]} {
    %c0 = arith.constant 0 : index
    %c0_0 = arith.constant 0 : index
    %0 = vector.load %arg1[%c0, %c0_0] : memref<1x128xf32, #tpu.memory_space<vmem>>, vector<1x128xf32>
    %c0_1 = arith.constant 0 : index
    %c0_2 = arith.constant 0 : index
    %1 = vector.load %arg2[%c0_1, %c0_2] : memref<32x5xf32, #tpu.memory_space<vmem>>, vector<32x5xf32>
    %2 = vector.extract_strided_slice %1 {offsets = [0, 0], sizes = [32, 1], strides = [1, 1]} : vector<32x5xf32> to vector<32x1xf32>
    %3 = vector.extract_strided_slice %1 {offsets = [0, 1], sizes = [32, 1], strides = [1, 1]} : vector<32x5xf32> to vector<32x1xf32>
    %4 = vector.broadcast %2 : vector<32x1xf32> to vector<32x128xf32>
    %5 = vector.broadcast %0 : vector<1x128xf32> to vector<32x128xf32>
    %6 = arith.mulf %4, %5 : vector<32x128xf32>
    %7 = vector.broadcast %3 : vector<32x1xf32> to vector<32x128xf32>
    %8 = arith.addf %6, %7 : vector<32x128xf32>
    %cst = arith.constant 0.000000e+00 : f32
    %9 = vector.broadcast %cst : f32 to vector<32x128xf32>
    %10 = arith.maximumf %8, %9 : vector<32x128xf32>
    %c0_3 = arith.constant 0 : index
    %c0_4 = arith.constant 0 : index
    %11 = vector.load %arg3[%c0_3, %c0_4] : memref<64x32xbf16, #tpu.memory_space<vmem>>, vector<64x32xbf16>
    %12 = vector.extract_strided_slice %11 {offsets = [0, 0], sizes = [32, 32], strides = [1, 1]} : vector<64x32xbf16> to vector<32x32xbf16>
    %13 = vector.extract_strided_slice %1 {offsets = [0, 2], sizes = [32, 1], strides = [1, 1]} : vector<32x5xf32> to vector<32x1xf32>
    %14 = arith.truncf %10 : vector<32x128xf32> to vector<32x128xbf16>
    %cst_5 = arith.constant dense<0.000000e+00> : vector<32x128xf32>
    %15 = tpu.matmul %12, %14, %cst_5 {dimension_numbers = #tpu.dot_dimension_numbers<[1], [0], [0], [1], [0, 0, 1, 1], [], []>} : vector<32x32xbf16>, vector<32x128xbf16>, vector<32x128xf32> -> vector<32x128xf32>
    %16 = vector.broadcast %13 : vector<32x1xf32> to vector<32x128xf32>
    %17 = arith.addf %15, %16 : vector<32x128xf32>
    %cst_6 = arith.constant 0.000000e+00 : f32
    %18 = vector.broadcast %cst_6 : f32 to vector<32x128xf32>
    %19 = arith.maximumf %17, %18 : vector<32x128xf32>
    %20 = vector.extract_strided_slice %11 {offsets = [32, 0], sizes = [32, 32], strides = [1, 1]} : vector<64x32xbf16> to vector<32x32xbf16>
    %21 = vector.extract_strided_slice %1 {offsets = [0, 3], sizes = [32, 1], strides = [1, 1]} : vector<32x5xf32> to vector<32x1xf32>
    %22 = arith.truncf %19 : vector<32x128xf32> to vector<32x128xbf16>
    %cst_7 = arith.constant dense<0.000000e+00> : vector<32x128xf32>
    %23 = tpu.matmul %20, %22, %cst_7 {dimension_numbers = #tpu.dot_dimension_numbers<[1], [0], [0], [1], [0, 0, 1, 1], [], []>} : vector<32x32xbf16>, vector<32x128xbf16>, vector<32x128xf32> -> vector<32x128xf32>
    %24 = vector.broadcast %21 : vector<32x1xf32> to vector<32x128xf32>
    %25 = arith.addf %23, %24 : vector<32x128xf32>
    %cst_8 = arith.constant 0.000000e+00 : f32
    %26 = vector.broadcast %cst_8 : f32 to vector<32x128xf32>
    %27 = arith.maximumf %25, %26 : vector<32x128xf32>
    %28 = vector.extract_strided_slice %1 {offsets = [0, 4], sizes = [16, 1], strides = [1, 1]} : vector<32x5xf32> to vector<16x1xf32>
    %c0_9 = arith.constant 0 : index
    %c0_10 = arith.constant 0 : index
    %29 = vector.load %arg4[%c0_9, %c0_10] : memref<16x32xbf16, #tpu.memory_space<vmem>>, vector<16x32xbf16>
    %30 = arith.truncf %27 : vector<32x128xf32> to vector<32x128xbf16>
    %cst_11 = arith.constant dense<0.000000e+00> : vector<16x128xf32>
    %31 = tpu.matmul %29, %30, %cst_11 {dimension_numbers = #tpu.dot_dimension_numbers<[1], [0], [0], [1], [0, 0, 1, 1], [], []>} : vector<16x32xbf16>, vector<32x128xbf16>, vector<16x128xf32> -> vector<16x128xf32>
    %32 = vector.broadcast %28 : vector<16x1xf32> to vector<16x128xf32>
    %33 = arith.addf %31, %32 : vector<16x128xf32>
    %c0_12 = arith.constant 0 : index
    %c0_13 = arith.constant 0 : index
    %34 = vector.load %arg5[%c0_12, %c0_13] : memref<16x128xf32, #tpu.memory_space<vmem>>, vector<16x128xf32>
    tpu.vector_store %arg5[%c0_12, %c0_13], %33 {strides = array<i32>} : memref<16x128xf32, #tpu.memory_space<vmem>>, vector<16x128xf32>,
    return
  }
  func.func @transform_0(%arg0: i32) -> (i32, i32) {
    %c0_i32 = arith.constant 0 : i32
    %c0_i32_0 = arith.constant 0 : i32
    return %c0_i32, %arg0 : i32, i32
  }
  func.func @transform_1(%arg0: i32) -> (i32, i32) {
    %c0_i32 = arith.constant 0 : i32
    %c0_i32_0 = arith.constant 0 : i32
    %c0_i32_1 = arith.constant 0 : i32
    return %c0_i32, %c0_i32_0 : i32, i32
  }
  func.func @transform_2(%arg0: i32) -> (i32, i32) {
    %c0_i32 = arith.constant 0 : i32
    %c0_i32_0 = arith.constant 0 : i32
    %c0_i32_1 = arith.constant 0 : i32
    return %c0_i32, %c0_i32_0 : i32, i32
  }
  func.func @transform_3(%arg0: i32) -> (i32, i32) {
    %c0_i32 = arith.constant 0 : i32
    %c0_i32_0 = arith.constant 0 : i32
    %c0_i32_1 = arith.constant 0 : i32
    return %c0_i32, %c0_i32_0 : i32, i32
  }
  func.func @transform_4(%arg0: i32) -> (i32, i32) {
    %c0_i32 = arith.constant 0 : i32
    %c0_i32_0 = arith.constant 0 : i32
    return %c0_i32, %arg0 : i32, i32
  }
}

</mosaic_0001>

<bundles_post_ra>
// kernel: tpu_custom_call.1
= control target key start
LH: loop header
LB: loop body
LE: loop exit
PB: predicated region body
PF: predicated region fallthrough
CT: control target
= control target key end

     0   :  { %v436_v1 = vmov 1   ;;  %v437_v2 = vmov 0   ;;  %s532_s0 = inlined_call_operand.vmem [shape: f32[1,128], index: 0, kind: input, shape index: {}]   ;;  %s533_s1 = inlined_call_operand.vmem [shape: f32[32,5], index: 1, kind: input, shape index: {}]   ;;  %s534_s2 = inlined_call_operand.vmem [shape: bf16[64,32], index: 2, kind: input, shape index: {}]   ;;  %s535_s3 = inlined_call_operand.vmem [shape: bf16[16,32], index: 3, kind: input, shape index: {}]   ;;  %s536_s4 = inlined_call_operand.hbm [shape: f32[16,128], index: 4, kind: output, shape index: {}]  }
   0x1   :  { %v474_v0 = vld [vmem:[%s533_s1] sm:$0xff]  ;;  %397 = vset.pattern.permute.xlu1 %v436_v1  ;;  %396 = vset.pattern.permute.xlu0 %v437_v2  ;;  %v479_v3 = vld [vmem:[%s533_s1 + $0x8] sm:$0xff] }
   0x2   :  { %55 = vperm.xlu1 %397, %v474_v0   ;;  %26 = vperm.xlu0 %396, %v474_v0  }
   0x3   :  { %9 = vsyncpa [#allocation3], 0  ;;  %v22_v4 = vld [vmem:[%s533_s1 + $0x10] sm:$0xff]  ;;  %v23_v5 = vld [vmem:[%s533_s1 + $0x18] sm:$0xff]  ;;  %vm114_vm0 = vcmask 261120   ;;  %v438_v7 = vmov 2  }
   0x4   :  { %v407_v6 = vld [vmem:[%s534_s2] sm:$0xff]   ;;  %v408_v31 = vld [vmem:[%s534_s2 + $0x8] sm:$0xff]   ;;  %v409_v32 = vld [vmem:[%s534_s2 + $0x10] sm:$0xff]   ;;  %v439_v33 = vmov 3   ;;  %v440_v53 = vmov 0.0   ;;  %vm441_vm1 = vmmov 0  }
   0x5   :  { %366 = vmatprep.mubr.msk.bf16.mxu0 %vm114_vm0, %v407_v6  ;;  %v340_v8 = vld [vmem:[%s532_s0] ss:$0 sm:$0xff]  ;;  %374 = vmatprep.mubr.msk.bf16.mxu1 %vm114_vm0, %v409_v32  ;;  %v410_v52 = vld [vmem:[%s534_s2 + $0x18] sm:$0xff]   ;;  %v442_v54 = vmov 4   ;;  %s443_s6 = smov [#allocation2]  }
   0x6   :  { %59 = vperm.xlu1 %397, %v479_v3   ;;  %31 = vperm.xlu0 %396, %v479_v3   ;;  %s329_s7 = sshll.u32 %s443_s6, 4  ;;  %s330_s7 = int_to_ptr.vmem [resolvable:$true] %s329_s7 }
   0x7   :  { %s412_s8 = scalar_lea.vmem %s330_s7, 256  ;;  %p417_p1 = scmp.lt.s32.totalorder %s330_s7, %s330_s7 }
   0x8   :  { %p413_p0 = scmp.ne.s32.totalorder %s330_s7, %s412_s8  ;;  %p418_p2 = scmp.lt.s32.totalorder %s412_s8, %s412_s8 }
   0xa   :  { %398 = vset.pattern.permute.xlu1 %v437_v2  ;;  %36 = vperm.xlu0 %396, %v22_v4   ;;  %p419_p3 = por %p418_p2, %p417_p1 }
   0xb   :  { %41 = vperm.xlu1 %398, %v23_v5  }
   0xc   :  { %p420_p4 = pnand %p419_p3, %p413_p0 }
   0xe   :  { %399 = vset.pattern.permute.xlu0 %v436_v1 }
   0xf   :  { %400 = vset.pattern.permute.xlu1 %v436_v1  ;;  %63 = vperm.xlu0 %399, %v22_v4  }
  0x10   :  { %67 = vperm.xlu1 %400, %v23_v5  }
  0x13   :  { %402 = vset.pattern.permute.xlu0 %v438_v7 }
  0x14   :  { %401 = vset.pattern.permute.xlu1 %v438_v7  ;;  %93 = vperm.xlu0 %402, %v479_v3  }
  0x15   :  { %89 = vperm.xlu1 %401, %v474_v0  }
  0x18   :  { %403 = vset.pattern.permute.xlu0 %v439_v33 }
  0x19   :  { %97 = vperm.xlu1 %401, %v22_v4   ;;  %177 = vperm.xlu0 %403, %v474_v0  }
  0x1d   :  { %101 = vperm.xlu1 %401, %v23_v5   ;;  %189 = vperm.xlu0 %403, %v23_v5  }
  0x21   :  { %404 = vset.pattern.permute.xlu1 %v439_v33  ;;  %406 = vset.pattern.permute.xlu0 %v442_v54 }
  0x22   :  { %181 = vperm.xlu1 %404, %v479_v3   ;;  %270 = vperm.xlu0 %406, %v479_v3   ;;  %v411_v3 = vld [vmem:[%s535_s3] sm:$0xff]  }
  0x26   :  { %185 = vperm.xlu1 %404, %v22_v4  }
  0x2a   :  { %405 = vset.pattern.permute.xlu1 %v442_v54 }
  0x2b   :  { %266 = vperm.xlu1 %405, %v474_v0  }
  0x81   :  { %v56_v9 = vpop.permute.xlu1 %55  ;;  %v27_v10 = vpop.permute.xlu0 %26 }
  0x82   :  { %v50_v11 = vmul.f32 %v340_v8, %v27_v10 }
  0x84   :  { %v70_v14 = vadd.f32 %v56_v9, %v50_v11 }
  0x85   :  { %v60_v12 = vpop.permute.xlu1 %59  ;;  %v32_v13 = vpop.permute.xlu0 %31 }
  0x86   :  { %v51_v15 = vmul.f32 %v340_v8, %v32_v13  ;;  %v74_v18 = vmax.f32 %v70_v14, 0.0 }
  0x88   :  { %v71_v16 = vadd.f32 %v60_v12, %v51_v15 }
  0x89   :  { %v37_v17 = vpop.permute.xlu0 %36 }
  0x8a   :  { %v75_v19 = vmax.f32 %v71_v16, 0.0  ;;  %v42_v20 = vpop.permute.xlu1 %41  ;;  %v52_v22 = vmul.f32 %v340_v8, %v37_v17 }
  0x8b   :  { %v53_v23 = vmul.f32 %v340_v8, %v42_v20 }
  0x8c   :  { %v86_v21 = vpack.c.bf16 %v75_v19, %v74_v18 }
  0x8e   :  { %v64_v24 = vpop.permute.xlu0 %63  ;;  %362 = vmatprep.subr.bf16.mxu0 %v86_v21 }
  0x8f   :  { %v72_v25 = vadd.f32 %v64_v24, %v52_v22  ;;  %v68_v26 = vpop.permute.xlu1 %67  ;;  %363 = vmatpush3.bf16.msra.mxu0 %v86_v21 }
  0x90   :  { %v73_v27 = vadd.f32 %v68_v26, %v53_v23 }
  0x91   :  { %v76_v28 = vmax.f32 %v72_v25, 0.0 }
  0x92   :  { %v77_v29 = vmax.f32 %v73_v27, 0.0 }
  0x93   :  { %v94_v39 = vpop.permute.xlu0 %93 }
  0x94   :  { %v87_v30 = vpack.c.bf16 %v77_v29, %v76_v28  ;;  %v90_v34 = vpop.permute.xlu1 %89 }
  0x96   :  { %364 = vmatprep.subr.bf16.mxu0 %v87_v30 }
  0x97   :  { %365 = vmatpush3.bf16.msra.mxu0 %v87_v30 }
  0x98   :  { %v98_v35 = vpop.permute.xlu1 %97  ;;  %378 = vmatprep.subr.bf16.mxu0 %v440_v53  ;;  %v178_v56 = vpop.permute.xlu0 %177 }
  0x9a   :  { %367 = vmatmul.mubr.msk.bf16.vlgmr.msra.gmra.mrb[0].mxu0 %vm114_vm0, %v408_v31 }
  0x9b   :  { %382 = vmatprep.mubr.msk.bf16.mxu0 %vm441_vm1, %v440_v53 }
  0x9c   :  { %v102_v40 = vpop.permute.xlu1 %101  ;;  %v190_v59 = vpop.permute.xlu0 %189 }
  0xa1   :  { %v182_v55 = vpop.permute.xlu1 %181  ;;  %v271_v12 = vpop.permute.xlu0 %270 }
  0xa5   :  { %v186_v57 = vpop.permute.xlu1 %185 }
  0xaa   :  { %v267_v10 = vpop.permute.xlu1 %266 }
 0x16d   :  { %v368_v36 = vpop.f32.mrb[0].mxu0 }
 0x16e   :  { %v164_v37 = vadd.f32 %v368_v36, %v98_v35  ;;  %v155_v38 = vpop.f32.mrb[1].mxu0 }
 0x16f   :  { %v156_v41 = vadd.f32 %v155_v38, %v90_v34  ;;  %v369_v42 = vpop.f32.mrb[2].mxu0 }
 0x170   :  { %v167_v43 = vadd.f32 %v369_v42, %v102_v40  ;;  %v158_v44 = vpop.f32.mrb[3].mxu0  ;;  %v172_v46 = vmax.f32 %v164_v37, 0.0 }
 0x171   :  { %v159_v45 = vadd.f32 %v158_v44, %v94_v39  ;;  %v170_v48 = vmax.f32 %v156_v41, 0.0 }
 0x172   :  { %v173_v47 = vmax.f32 %v167_v43, 0.0 }
 0x173   :  { %v171_v49 = vmax.f32 %v159_v45, 0.0 }
 0x174   :  { %v175_v50 = vpack.c.bf16 %v173_v47, %v172_v46 }
 0x175   :  { %v174_v51 = vpack.c.bf16 %v171_v49, %v170_v48 }
 0x177   :  { %370 = vmatprep.subr.bf16.mxu1 %v174_v51 }
 0x178   :  { %371 = vmatpush3.bf16.msra.mxu1 %v174_v51 }
 0x179   :  { %372 = vmatprep.subr.bf16.mxu1 %v175_v50 }
 0x17c   :  { %373 = vmatpush3.bf16.msra.mxu1 %v175_v50 }
 0x17f   :  { %375 = vmatmul.mubr.msk.bf16.vlgmr.msra.gmra.mrb[0].mxu1 %vm114_vm0, %v410_v52 }
 0x252   :  { %v376_v58 = vpop.f32.mrb[0].mxu1 }
 0x253   :  { %v251_v60 = vadd.f32 %v376_v58, %v186_v57  ;;  %v242_v61 = vpop.f32.mrb[1].mxu1 }
 0x254   :  { %v243_v62 = vadd.f32 %v242_v61, %v178_v56  ;;  %v377_v63 = vpop.f32.mrb[2].mxu1 }
 0x255   :  { %v254_v1 = vadd.f32 %v377_v63, %v190_v59  ;;  %v245_v2 = vpop.f32.mrb[3].mxu1  ;;  %v259_v5 = vmax.f32 %v251_v60, 0.0 }
 0x256   :  { %v246_v4 = vadd.f32 %v245_v2, %v182_v55  ;;  %v257_v7 = vmax.f32 %v243_v62, 0.0 }
 0x257   :  { %v260_v6 = vmax.f32 %v254_v1, 0.0 }
 0x258   :  { %v258_v8 = vmax.f32 %v246_v4, 0.0 }
 0x259   :  { %v264_v9 = vpack.c.bf16 %v260_v6, %v259_v5 }
 0x25a   :  { %v263_v0 = vpack.c.bf16 %v258_v8, %v257_v7 }
 0x25c   :  { %379 = vmatpush3.bf16.msra.mxu0 %v263_v0 }
 0x25d   :  { %380 = vmatprep.subr.bf16.mxu0 %v440_v53 }
 0x260   :  { %381 = vmatpush3.bf16.msra.mxu0 %v264_v9 }
 0x263   :  { %383 = vmatmul.mubr.msk.bf16.vlgmr.msra.gmra.mrb[4].mxu0 %vm114_vm0, %v411_v3 }
 0x336   :  { %v315_v11 = vpop.f32.mrb[4].mxu0 }
 0x337   :  { %v316_v13 = vadd.f32 %v315_v11, %v267_v10  ;;  %v384_v14 = vpop.f32.mrb[5].mxu0 }
 0x338   :  { %v318_v15 = vpop.f32.mrb[6].mxu0 }
 0x339   :  { %322 = vst [vmem:[#allocation2] sm:$0xff] %v316_v13  ;;  %v319_v16 = vadd.f32 %v318_v15, %v271_v12  ;;  %v385_v17 = vpop.f32.mrb[7].mxu0 }
 0x33b   :  { %323 = vst [vmem:[#allocation2 + $0x8] sm:$0xff] %v319_v16 }
 0x33c   :  { %423 = shalt.err (!%p420_p4)
}
 0x33d   :  { %s424_s10 = scalar_lea.hbm %s536_s4, 256 }
 0x33e   :  { %p425_p5 = scmp.ne.s32.totalorder %s536_s4, %s424_s10  ;;  %p428_p6 = scmp.lt.u32.totalorder %s424_s10, %s536_s4 }
 0x340   :  { %p430_p7 = pnand %p428_p6, %p425_p5 }
 0x342   :  { %433 = shalt.err (!%p430_p7)
}
 0x343   :  { %s444_s15 = smov 128   ;;  %s445_s16 = smov 8  }
 0x344   :  { %335 = dma.vmem_to_hbm [thread:$0]  %s330_s7, 256, %s536_s4, [#allocation3], %s444_s15, %s444_s15, %s445_s16  }
 0x345   :  { %434 = dma.done.wait [#allocation3], 256  }
 0x346   :  { %435 = vsyncadd [#allocation3], 4294967040 }
 0x347   :  { %339 = vsyncpa [#allocation3], 1 }

</bundles_post_ra>
